<compile_context>
chip_gen: v7x
topology: tpu7x:2x2x1
jax: 0.10.0
libtpu: 0.0.40
codegen_flags: <defaults>
</compile_context>

<pallas_src>
import jax
import jax.numpy as jnp
from jax.experimental import pallas as pl
from jax.experimental.pallas import tpu as pltpu


def _round_up(x, m):
    return ((x + m - 1) // m) * m


def _pick_tile(dim, ladder):
    """Pick the ladder entry that minimizes padding of `dim` (ties -> larger tile)."""
    best_t = ladder[-1]
    best_pad = _round_up(dim, best_t)
    for t in ladder:
        p = _round_up(dim, t)
        if p < best_pad or (p == best_pad and t > best_t):
            best_pad, best_t = p, t
    return best_t


# ----------------------------- kernels ------------------------------------ #

def _linear_kernel_f32_out(x_ref, w_ref, b_ref, o_ref):
    # x_ref: (tm, tk) bf16   w_ref: (tk, tn) bf16   b_ref: (1, tn) f32
    # o_ref: (tm, tn) f32 -- doubles as the K-resident accumulator.
    k = pl.program_id(2)
    partial = jnp.dot(x_ref[...], w_ref[...], preferred_element_type=jnp.float32)

    @pl.when(k == 0)
    def _():
        o_ref[...] = partial

    @pl.when(k != 0)
    def _():
        o_ref[...] += partial

    @pl.when(k == pl.num_programs(2) - 1)
    def _():
        o_ref[...] += b_ref[...]


def _linear_kernel_acc(x_ref, w_ref, b_ref, o_ref, acc_ref):
    # Non-f32 output: accumulate in an f32 VMEM scratch, cast in the epilogue.
    k = pl.program_id(2)
    partial = jnp.dot(x_ref[...], w_ref[...], preferred_element_type=jnp.float32)

    @pl.when(k == 0)
    def _():
        acc_ref[...] = partial

    @pl.when(k != 0)
    def _():
        acc_ref[...] += partial

    @pl.when(k == pl.num_programs(2) - 1)
    def _():
        o_ref[...] = (acc_ref[...] + b_ref[...]).astype(o_ref.dtype)


# ----------------------------- wrapper ------------------------------------ #

class LinkAsTorchModelLinear:
    """Pallas analogue of LinkAsTorchModel wrapping chainer.links.Linear.

    Weight padding / transpose / bf16 cast happens once here (the analogue of
    ChainerParameter creation at LinkAsTorchModel construction), NOT per call.
    """

    def __init__(self, W, b, *, compute_dtype=jnp.bfloat16,
                 tm_max=512, tn_max=1024, tk_max=2048):
        W = jnp.asarray(W)
        b = jnp.asarray(b)
        OUT, IN = W.shape
        assert b.shape == (OUT,)
        self.out_features = OUT
        self.in_features = IN
        self.compute_dtype = compute_dtype

        self._tm_ladder = tuple(t for t in (512, 256, 128, 64, 32, 16, 8) if t <= tm_max) or (8,)
        tn_ladder = tuple(t for t in (1024, 512, 256, 128) if t <= tn_max) or (128,)
        tk_ladder = tuple(t for t in (2048, 1024, 512, 256, 128) if t <= tk_max) or (128,)

        self._tn = _pick_tile(OUT, tn_ladder)
        self._tk = _pick_tile(IN, tk_ladder)
        self._OUTp = _round_up(OUT, self._tn)
        self._INp = _round_up(IN, self._tk)

        # One-time weight prep (amortized over all forward calls):
        #   pad -> transpose to (IN, OUT) -> cast to the MXU compute dtype.
        Wp = W
        if self._OUTp != OUT or self._INp != IN:
            Wp = jnp.pad(W, ((0, self._OUTp - OUT), (0, self._INp - IN)))
        self._Wt = jnp.asarray(Wp.T, dtype=compute_dtype)          # (INp, OUTp)

        bpad = b if self._OUTp == OUT else jnp.pad(b, (0, self._OUTp - OUT))
        self._b = bpad.reshape(1, self._OUTp).astype(jnp.float32)  # (1, OUTp)

    def __call__(self, x):
        x = jnp.asarray(x)
        B, IN = x.shape
        assert IN == self.in_features
        out_dtype = x.dtype

        OUT, OUTp, INp = self.out_features, self._OUTp, self._INp
        tn, tk = self._tn, self._tk

        tm = _pick_tile(B, self._tm_ladder)
        Bp = _round_up(B, tm)

        # v7x megacore: guarantee the two "parallel" grid axes expose >= 2
        # blocks so both TensorCores get work (no-op / harmless on v5e, v6e).
        while (Bp // tm) * (OUTp // tn) < 2:
            if tn >= 256:
                tn //= 2               # OUTp stays divisible (power-of-2 ladder)
            elif tm >= 16:
                tm //= 2
                Bp = _round_up(B, tm)
            else:
                break

        # Per-call activation prep: pad (zero rows/cols contribute nothing) and
        # cast to the MXU compute dtype.  x is the small array; this is cheap.
        xp = x
        if Bp != B or INp != IN:
            xp = jnp.pad(xp, ((0, Bp - B), (0, INp - IN)))
        xp = xp.astype(self.compute_dtype)

        grid = (Bp // tm, OUTp // tn, INp // tk)

        if jnp.dtype(out_dtype) == jnp.dtype(jnp.float32):
            kernel = _linear_kernel_f32_out
            scratch = []
        else:
            kernel = _linear_kernel_acc
            scratch = [pltpu.VMEM((tm, tn), jnp.float32)]

        csize = jnp.dtype(self.compute_dtype).itemsize
        osize = jnp.dtype(out_dtype).itemsize
        cost = pl.CostEstimate(
            flops=2 * B * IN * OUT,
            transcendentals=0,
            bytes_accessed=(B * IN + OUT * IN) * csize + OUT * 4 + B * OUT * osize,
        )

        out = pl.pallas_call(
            kernel,
            out_shape=jax.ShapeDtypeStruct((Bp, OUTp), out_dtype),
            grid_spec=pltpu.PrefetchScalarGridSpec(
                num_scalar_prefetch=0,
                grid=grid,
                in_specs=[
                    pl.BlockSpec((tm, tk), lambda i, j, k: (i, k)),   # x tile
                    pl.BlockSpec((tk, tn), lambda i, j, k: (k, j)),   # W^T tile (in, out)
                    pl.BlockSpec((1, tn), lambda i, j, k: (0, j)),    # bias tile
                ],
                out_specs=pl.BlockSpec((tm, tn), lambda i, j, k: (i, j)),
                scratch_shapes=scratch,
            ),
            compiler_params=pltpu.CompilerParams(
                dimension_semantics=("parallel", "parallel", "arbitrary"),
            ),
            cost_estimate=cost,
        )(xp, self._Wt, self._b)

        return out[:B, :OUT]


def link_as_torch_model_forward(x, W, b, **kwargs):
    """One-shot functional form (constructs the model each call; prefer the class)."""
    return LinkAsTorchModelLinear(W, b, **kwargs)(x)


if __name__ == "__main__":
    key = jax.random.PRNGKey(0)

    # --- Test 1: small shapes (needs lane/sublane padding; single parallel block,
    # exercises the megacore-adjust termination path). ---
    batch, in_features, out_features = 8, 32, 32
    kx, kw, kb = jax.random.split(key, 3)
    x = jax.random.normal(kx, (batch, in_features), dtype=jnp.float32)
    W = jax.random.normal(kw, (out_features, in_features), dtype=jnp.float32) * 0.1
    b = jax.random.normal(kb, (out_features,), dtype=jnp.float32) * 0.1

    model = LinkAsTorchModelLinear(W, b)
    y = jax.block_until_ready(model(x))
    y_ref = x @ W.T + b
    assert y.shape == (batch, out_features)
    assert y.dtype == jnp.float32
    assert jnp.allclose(y, y_ref, atol=2e-2, rtol=2e-2)  # bf16 MXU path, f32 accumulation

    # --- Test 2: force a multi-tile (2, 2, 2) grid to exercise K-accumulation
    # directly into o_ref and the per-tile bias epilogue. ---
    batch2, in2, out2 = 16, 256, 256
    kx2, kw2, kb2 = jax.random.split(jax.random.PRNGKey(1), 3)
    x2 = jax.random.normal(kx2, (batch2, in2), dtype=jnp.float32)
    W2 = jax.random.normal(kw2, (out2, in2), dtype=jnp.float32) * 0.05
    b2 = jax.random.normal(kb2, (out2,), dtype=jnp.float32) * 0.05

    model2 = LinkAsTorchModelLinear(W2, b2, tm_max=8, tn_max=128, tk_max=128)
    y2 = jax.block_until_ready(model2(x2))
    y2_ref = x2 @ W2.T + b2
    assert y2.shape == (batch2, out2)
    assert jnp.allclose(y2, y2_ref, atol=5e-2, rtol=5e-2)

    # --- Test 3: bf16 activations / bf16 output -> exercises the f32-scratch
    # accumulator kernel variant. ---
    batch3, in3, out3 = 8, 128, 128
    kx3, kw3, kb3 = jax.random.split(jax.random.PRNGKey(2), 3)
    x3 = jax.random.normal(kx3, (batch3, in3), dtype=jnp.float32).astype(jnp.bfloat16)
    W3 = jax.random.normal(kw3, (out3, in3), dtype=jnp.float32) * 0.05
    b3 = jax.random.normal(kb3, (out3,), dtype=jnp.float32) * 0.05

    model3 = LinkAsTorchModelLinear(W3, b3)
    y3 = jax.block_until_ready(model3(x3))
    y3_ref = x3.astype(jnp.float32) @ W3.T + b3
    assert y3.shape == (batch3, out3)
    assert y3.dtype == jnp.bfloat16
    assert jnp.allclose(y3.astype(jnp.float32), y3_ref, atol=6e-2, rtol=6e-2)

    # TODO(synk): ChainerParameter.grad buffer sharing and _ChainerTensor.backward
    # are host-side framework glue (gradient aliasing between Chainer and PyTorch)
    # with no Pallas equivalent; only the forward compute is implemented here.
    print("KERNEL_OK")
</pallas_src>

<mosaic_0001>
module attributes {stable_mosaic.version = 11 : i64} {
  func.func @_linear_kernel_f32_out(%arg0: i32, %arg1: i32, %arg2: i32, %arg3: memref<8x128xbf16, #tpu.memory_space<vmem>>, %arg4: memref<128x128xbf16, #tpu.memory_space<vmem>>, %arg5: memref<1x128xf32, #tpu.memory_space<vmem>>, %arg6: memref<8x128xf32, #tpu.memory_space<vmem>>) attributes {dimension_semantics = [#tpu.dimension_semantics<parallel>, #tpu.dimension_semantics<parallel>, #tpu.dimension_semantics<arbitrary>], iteration_bounds = array<i64: 1, 1, 1>, scalar_prefetch = 0 : i64, scratch_operands = 0 : i64, tpu.core_type = #tpu.core_type<tc>, window_params = [{transform_indices = @transform_0, window_bounds = array<i64: 8, 128>}, {transform_indices = @transform_1, window_bounds = array<i64: 128, 128>}, {transform_indices = @transform_2, window_bounds = array<i64: 1, 128>}, {transform_indices = @transform_3, window_bounds = array<i64: 8, 128>}]} {
    %c0 = arith.constant 0 : index
    %c0_0 = arith.constant 0 : index
    %0 = vector.load %arg3[%c0, %c0_0] : memref<8x128xbf16, #tpu.memory_space<vmem>>, vector<8x128xbf16>
    %c0_1 = arith.constant 0 : index
    %c0_2 = arith.constant 0 : index
    %1 = vector.load %arg4[%c0_1, %c0_2] : memref<128x128xbf16, #tpu.memory_space<vmem>>, vector<128x128xbf16>
    %cst = arith.constant dense<0.000000e+00> : vector<8x128xf32>
    %2 = tpu.matmul %0, %1, %cst {dimension_numbers = #tpu.dot_dimension_numbers<[1], [0], [0], [1], [0, 0, 1, 1], [], []>} : vector<8x128xbf16>, vector<128x128xbf16>, vector<8x128xf32> -> vector<8x128xf32>
    %c0_i32 = arith.constant 0 : i32
    %3 = arith.cmpi eq, %arg2, %c0_i32 : i32
    %4 = arith.extui %3 : i1 to i32
    %c0_i32_3 = arith.constant 0 : i32
    %5 = arith.cmpi ne, %4, %c0_i32_3 : i32
    scf.if %5 {
      %c0_8 = arith.constant 0 : index
      %c0_9 = arith.constant 0 : index
      %12 = vector.load %arg6[%c0_8, %c0_9] : memref<8x128xf32, #tpu.memory_space<vmem>>, vector<8x128xf32>
      tpu.vector_store %arg6[%c0_8, %c0_9], %2 {strides = array<i32>} : memref<8x128xf32, #tpu.memory_space<vmem>>, vector<8x128xf32>,
    } else {
    }
    %c0_i32_4 = arith.constant 0 : i32
    %6 = arith.cmpi ne, %arg2, %c0_i32_4 : i32
    %7 = arith.extui %6 : i1 to i32
    %c0_i32_5 = arith.constant 0 : i32
    %8 = arith.cmpi ne, %7, %c0_i32_5 : i32
    scf.if %8 {
      %c0_8 = arith.constant 0 : index
      %c0_9 = arith.constant 0 : index
      %12 = vector.load %arg6[%c0_8, %c0_9] : memref<8x128xf32, #tpu.memory_space<vmem>>, vector<8x128xf32>
      %13 = arith.addf %12, %2 : vector<8x128xf32>
      %c0_10 = arith.constant 0 : index
      %c0_11 = arith.constant 0 : index
      %14 = vector.load %arg6[%c0_10, %c0_11] : memref<8x128xf32, #tpu.memory_space<vmem>>, vector<8x128xf32>
      tpu.vector_store %arg6[%c0_10, %c0_11], %13 {strides = array<i32>} : memref<8x128xf32, #tpu.memory_space<vmem>>, vector<8x128xf32>,
    } else {
    }
    %c0_i32_6 = arith.constant 0 : i32
    %9 = arith.cmpi eq, %arg2, %c0_i32_6 : i32
    %10 = arith.extui %9 : i1 to i32
    %c0_i32_7 = arith.constant 0 : i32
    %11 = arith.cmpi ne, %10, %c0_i32_7 : i32
    scf.if %11 {
      %c0_8 = arith.constant 0 : index
      %c0_9 = arith.constant 0 : index
      %12 = vector.load %arg6[%c0_8, %c0_9] : memref<8x128xf32, #tpu.memory_space<vmem>>, vector<8x128xf32>
      %c0_10 = arith.constant 0 : index
      %c0_11 = arith.constant 0 : index
      %13 = vector.load %arg5[%c0_10, %c0_11] : memref<1x128xf32, #tpu.memory_space<vmem>>, vector<1x128xf32>
      %14 = vector.broadcast %13 : vector<1x128xf32> to vector<8x128xf32>
      %15 = arith.addf %12, %14 : vector<8x128xf32>
      %c0_12 = arith.constant 0 : index
      %c0_13 = arith.constant 0 : index
      %16 = vector.load %arg6[%c0_12, %c0_13] : memref<8x128xf32, #tpu.memory_space<vmem>>, vector<8x128xf32>
      tpu.vector_store %arg6[%c0_12, %c0_13], %15 {strides = array<i32>} : memref<8x128xf32, #tpu.memory_space<vmem>>, vector<8x128xf32>,
    } else {
    }
    return
  }
  func.func @transform_0(%arg0: i32, %arg1: i32, %arg2: i32) -> (i32, i32) {
    %c0_i32 = arith.constant 0 : i32
    return %arg0, %arg2 : i32, i32
  }
  func.func @transform_1(%arg0: i32, %arg1: i32, %arg2: i32) -> (i32, i32) {
    %c0_i32 = arith.constant 0 : i32
    return %arg2, %arg1 : i32, i32
  }
  func.func @transform_2(%arg0: i32, %arg1: i32, %arg2: i32) -> (i32, i32) {
    %c0_i32 = arith.constant 0 : i32
    %c0_i32_0 = arith.constant 0 : i32
    return %c0_i32, %arg1 : i32, i32
  }
  func.func @transform_3(%arg0: i32, %arg1: i32, %arg2: i32) -> (i32, i32) {
    %c0_i32 = arith.constant 0 : i32
    return %arg0, %arg1 : i32, i32
  }
}

</mosaic_0001>

<bundles_post_ra>
// kernel: tpu_custom_call.1
= control target key start
LH: loop header
LB: loop body
LE: loop exit
PB: predicated region body
PF: predicated region fallthrough
CT: control target
= control target key end

     0   :  { %8 = vsyncpa [#allocation3], 0  ;;  %s386_s0 = inlined_call_operand.hbm [shape: bf16[8,128], index: 0, kind: input, shape index: {}]   ;;  %s387_s1 = inlined_call_operand.hbm [shape: bf16[128,128], index: 1, kind: input, shape index: {}]   ;;  %s388_s2 = inlined_call_operand.vmem [shape: f32[1,128], index: 2, kind: input, shape index: {}]   ;;  %s389_s3 = inlined_call_operand.hbm [shape: f32[8,128], index: 3, kind: output, shape index: {}]  }
   0x1   :  { %9 = vsyncpa [#allocation6], 0 }
   0x2   :  { %10 = vsyncpa [#allocation4], 0  ;;  %s313_s12 = smov [#allocation2]   ;;  %s314_s14 = smov [#allocation5]  }
   0x3   :  { %s17_s13 = sshll.u32 %s313_s12, 4  ;;  %s26_s15 = sshll.u32 %s314_s14, 4  ;;  %s18_s13 = int_to_ptr.vmem [resolvable:$true] %s17_s13  ;;  %s340_s15 = int_to_ptr.vmem [resolvable:$true] %s26_s15 }
   0x4   :  { %s241_s18 = scalar_lea.hbm %s386_s0, 64 }
   0x5   :  { %p242_p0 = scmp.ne.s32.totalorder %s386_s0, %s241_s18  ;;  %p245_p1 = scmp.lt.u32.totalorder %s241_s18, %s386_s0 }
   0x7   :  { %p247_p2 = pnand %p245_p1, %p242_p0 }
   0x9   :  { %250 = shalt.err (!%p247_p2)
}
   0xa   :  { %s251_s23 = scalar_lea.vmem %s18_s13, 64  ;;  %p256_p4 = scmp.lt.s32.totalorder %s18_s13, %s18_s13 }
   0xb   :  { %p252_p3 = scmp.ne.s32.totalorder %s18_s13, %s251_s23  ;;  %p257_p5 = scmp.lt.s32.totalorder %s251_s23, %s251_s23 }
   0xd   :  { %p258_p6 = por %p257_p5, %p256_p4 }
   0xf   :  { %p259_p7 = pnand %p258_p6, %p252_p3 }
  0x11   :  { %262 = shalt.err (!%p259_p7)
}
  0x12   :  { %20 = dma.hbm_to_vmem [thread:$0]  %s386_s0, 64, %s18_s13, [#allocation3]  }
  0x13   :  { %s263_s28 = scalar_lea.hbm %s387_s1, 1024 }
  0x14   :  { %p264_p8 = scmp.ne.s32.totalorder %s387_s1, %s263_s28  ;;  %p267_p9 = scmp.lt.u32.totalorder %s263_s28, %s387_s1 }
  0x16   :  { %p269_p10 = pnand %p267_p9, %p264_p8 }
  0x18   :  { %272 = shalt.err (!%p269_p10)
}
  0x19   :  { %s273_s6 = scalar_lea.vmem %s340_s15, 1024  ;;  %p278_p12 = scmp.lt.s32.totalorder %s340_s15, %s340_s15 }
  0x1a   :  { %p274_p11 = scmp.ne.s32.totalorder %s340_s15, %s273_s6  ;;  %p279_p13 = scmp.lt.s32.totalorder %s273_s6, %s273_s6 }
  0x1c   :  { %p280_p0 = por %p279_p13, %p278_p12 }
  0x1e   :  { %p281_p1 = pnand %p280_p0, %p274_p11 }
  0x20   :  { %284 = shalt.err (!%p281_p1)
}
  0x21   :  { %s315_s0 = smov 64   ;;  %s316_s7 = smov 4  }
  0x22   :  { %32 = dma.hbm_to_vmem [thread:$0]  %s387_s1, 1024, %s340_s15, [#allocation6], %s315_s0, %s315_s0, %s316_s7  }
  0x23   :  { %307 = dma.done.wait [#allocation3], 64  }
  0x24   :  { %308 = vsyncadd [#allocation3], 4294967232 }
  0x25   :  { %309 = dma.done.wait [#allocation6], 1024  }
  0x26   :  { %310 = vsyncadd [#allocation6], 4294966272  ;;  %v317_v0 = vmov 0.0   ;;  %vm318_vm0 = vmmov 0   ;;  %v233_v1 = vld [vmem:[#allocation5] sm:$0xff]   ;;  %v234_v2 = vld [vmem:[#allocation5 + $0x8] sm:$0xff]  }
  0x27   :  { %206 = vmatprep.subr.bf16.mxu0 %v317_v0  ;;  %222 = vmatprep.mubr.msk.bf16.mxu0 %vm318_vm0, %v317_v0  ;;  %v235_v3 = vld [vmem:[#allocation5 + $0x10] sm:$0xff]   ;;  %v236_v4 = vld [vmem:[#allocation5 + $0x18] sm:$0xff]   ;;  %v237_v5 = vld [vmem:[#allocation5 + $0x20] sm:$0xff]   ;;  %s319_s11 = smov [#allocation7]  }
  0x28   :  { %207 = vmatpush3.bf16.msra.mxu0 %v233_v1  ;;  %v238_v6 = vld [vmem:[#allocation5 + $0x28] sm:$0xff]   ;;  %v239_v7 = vld [vmem:[#allocation5 + $0x30] sm:$0xff]   ;;  %v240_v8 = vld [vmem:[#allocation5 + $0x38] sm:$0xff]   ;;  %s178_s12 = sshll.u32 %s319_s11, 4  ;;  %s179_s12 = int_to_ptr.vmem [resolvable:$true] %s178_s12 }
  0x29   :  { %208 = vmatprep.subr.bf16.mxu0 %v317_v0  ;;  %v42_v9 = vld [vmem:[#allocation2] sm:$0xf]  ;;  %s285_s13 = scalar_lea.vmem %s179_s12, 128  ;;  %p290_p3 = scmp.lt.s32.totalorder %s179_s12, %s179_s12 }
  0x2a   :  { %v196_v10 = vld [vmem:[%s388_s2] ss:$0 sm:$0xff]  ;;  %p286_p2 = scmp.ne.s32.totalorder %s179_s12, %s285_s13  ;;  %p291_p4 = scmp.lt.s32.totalorder %s285_s13, %s285_s13 }
  0x2c   :  { %209 = vmatpush3.bf16.msra.mxu0 %v234_v2  ;;  %p292_p5 = por %p291_p4, %p290_p3 }
  0x2d   :  { %210 = vmatprep.subr.bf16.mxu0 %v317_v0 }
  0x2e   :  { %p293_p6 = pnand %p292_p5, %p286_p2 }
  0x30   :  { %211 = vmatpush3.bf16.msra.mxu0 %v235_v3 }
  0x31   :  { %212 = vmatprep.subr.bf16.mxu0 %v317_v0 }
  0x34   :  { %213 = vmatpush3.bf16.msra.mxu0 %v236_v4 }
  0x35   :  { %214 = vmatprep.subr.bf16.mxu0 %v317_v0 }
  0x38   :  { %215 = vmatpush3.bf16.msra.mxu0 %v237_v5 }
  0x39   :  { %216 = vmatprep.subr.bf16.mxu0 %v317_v0 }
  0x3c   :  { %217 = vmatpush3.bf16.msra.mxu0 %v238_v6 }
  0x3d   :  { %218 = vmatprep.subr.bf16.mxu0 %v317_v0 }
  0x40   :  { %219 = vmatpush3.bf16.msra.mxu0 %v239_v7 }
  0x41   :  { %220 = vmatprep.subr.bf16.mxu0 %v317_v0 }
  0x44   :  { %221 = vmatpush3.bf16.msra.mxu0 %v240_v8 }
  0x47   :  { %223 = vmatmul.mubr.bf16.vlgmr.msra.gmra.mrb[0].mxu0 %v42_v9 }
 0x11a   :  { %v141_v11 = vpop.f32.mrb[0].mxu0 }
 0x11b   :  { %v224_v12 = vpop.f32.mrb[1].mxu0  ;;  %v170_v13 = vadd.f32 %v196_v10, %v141_v11 }
 0x11c   :  { %v144_v14 = vpop.f32.mrb[2].mxu0 }
 0x11d   :  { %v225_v15 = vpop.f32.mrb[3].mxu0  ;;  %171 = vst [vmem:[#allocation7] sm:$0xff] %v170_v13 }
 0x11e   :  { %296 = shalt.err (!%p293_p6)
}
 0x11f   :  { %s297_s2 = scalar_lea.hbm %s389_s3, 128 }
 0x120   :  { %p298_p7 = scmp.ne.s32.totalorder %s389_s3, %s297_s2  ;;  %p301_p8 = scmp.lt.u32.totalorder %s297_s2, %s389_s3 }
 0x122   :  { %p303_p9 = pnand %p301_p8, %p298_p7 }
 0x124   :  { %306 = shalt.err (!%p303_p9)
}
 0x125   :  { %181 = dma.vmem_to_hbm [thread:$0]  %s179_s12, 128, %s389_s3, [#allocation4]  }
 0x126   :  { %311 = dma.done.wait [#allocation4], 128  }
 0x127   :  { %312 = vsyncadd [#allocation4], 4294967168 }
 0x128   :  { %185 = vsyncpa [#allocation3], 1 }
 0x129   :  { %186 = vsyncpa [#allocation6], 1 }
 0x12a   :  { %187 = vsyncpa [#allocation4], 1 }

</bundles_post_ra>
